<compile_context>
chip_gen: v7x
topology: tpu7x:2x2x1
jax: 0.10.0
libtpu: 0.0.40
codegen_flags: <defaults>
</compile_context>

<pallas_src>
import jax
import jax.numpy as jnp
from jax.experimental import pallas as pl
from jax.experimental.pallas import tpu as pltpu


def _ensemble_kernel(x_ref, w_ref, b_ref, o_ref):
    """One grid step of the effective-weight GEMM.

    x_ref : VMEM (tB, tD)   input tile (compute dtype)
    w_ref : VMEM (tD, Kp)   effective weight tile (compute dtype)
    b_ref : VMEM (1, Kp)    precombined bias, f32
    o_ref : VMEM (tB, Kp)   f32 output, resident across the D (reduction) axis
    """
    di = pl.program_id(1)

    @pl.when(di == 0)
    def _():
        # Initialize the resident output with the precombined bias.
        o_ref[...] = jnp.broadcast_to(b_ref[...], o_ref.shape)

    o_ref[...] += jnp.dot(x_ref[...], w_ref[...],
                          preferred_element_type=jnp.float32)


def _round_up(n, m):
    return -(-n // m) * m


def _sublane_multiple(dtype):
    # Packed sublane tile: 8 rows for 32-bit, 16 for bf16, 32 for int8/fp8.
    return max(8, 32 // jnp.dtype(dtype).itemsize)


def ensemble_net_forward(x, w_all, b_all, weights=None, *,
                         compute_dtype=jnp.bfloat16,
                         b_tile_cap=512,
                         d_tile_cap=4096,
                         vmem_limit_bytes=48 * 1024 * 1024):
    """x: (B, C, H, W); w_all: (M, D, K); b_all: (M, K); weights: (M,) or None."""
    B = x.shape[0]
    M, D, K = w_all.shape
    x_flat = x.reshape(B, -1)           # same flatten order as torch .view(B, -1)
    assert x_flat.shape[1] == D

    # ---- cheap glue math in the wrapper (exact f32) ---------------------------
    if weights is None:
        coef = jnp.full((M,), 1.0 / M, dtype=jnp.float32)
    else:
        coef = jax.nn.softmax(weights.astype(jnp.float32), axis=0) / M

    # Members are linear -> collapse the ensemble into one effective layer.
    w_eff = jnp.einsum('m,mdk->dk', coef, w_all.astype(jnp.float32))   # (D, K)
    b_eff = (coef @ b_all.astype(jnp.float32)).reshape(1, K)           # (1, K)

    # ---- tiling ---------------------------------------------------------------
    itemsize = jnp.dtype(compute_dtype).itemsize
    sub = _sublane_multiple(compute_dtype)

    Kp = _round_up(K, 128)                              # lane-dense output/weights

    tB = min(_round_up(B, sub), _round_up(b_tile_cap, sub))
    B_pad = _round_up(B, tB)

    # Double-buffered x & W tiles + resident f32 output + bias must fit a
    # conservative fraction of the scoped-VMEM limit.
    tile_budget = (vmem_limit_bytes * 3) // 4
    fixed_bytes = tB * Kp * 4 + Kp * 4                  # resident out + bias
    per_row = 2 * (tB + Kp) * itemsize                  # double-buffered x + W rows
    tD_cap = (max(tile_budget - fixed_bytes, per_row * 128) // per_row) // 128 * 128
    tD = max(128, min(tD_cap, d_tile_cap, _round_up(D, 128)))
    D_pad = _round_up(D, tD)

    # Zero-pad (keeps results exact; padded rows/cols are sliced off below).
    x_p = jnp.zeros((B_pad, D_pad), compute_dtype).at[:B, :D].set(
        x_flat.astype(compute_dtype))
    w_p = jnp.zeros((D_pad, Kp), compute_dtype).at[:D, :K].set(
        w_eff.astype(compute_dtype))
    b_p = jnp.zeros((1, Kp), jnp.float32).at[:, :K].set(b_eff)

    grid = (B_pad // tB, D_pad // tD)

    out = pl.pallas_call(
        _ensemble_kernel,
        out_shape=jax.ShapeDtypeStruct((B_pad, Kp), jnp.float32),
        grid_spec=pltpu.PrefetchScalarGridSpec(
            num_scalar_prefetch=0,
            grid=grid,
            in_specs=[
                pl.BlockSpec((tB, tD), lambda bi, di: (bi, di)),   # x tile
                pl.BlockSpec((tD, Kp), lambda bi, di: (di, 0)),    # W_eff tile
                pl.BlockSpec((1, Kp), lambda bi, di: (0, 0)),      # bias
            ],
            out_specs=pl.BlockSpec((tB, Kp), lambda bi, di: (bi, 0)),
        ),
        compiler_params=pltpu.CompilerParams(
            dimension_semantics=("parallel", "arbitrary"),
            vmem_limit_bytes=vmem_limit_bytes),
    )(x_p, w_p, b_p)

    return out[:B, :K]


def ensemble_net_reference(x, w_all, b_all, weights=None):
    """Pure-JAX reference mirroring the PyTorch forward exactly."""
    B = x.shape[0]
    M, D, K = w_all.shape
    x_flat = x.reshape(B, D).astype(jnp.float32)
    wf = w_all.astype(jnp.float32)
    bf = b_all.astype(jnp.float32)
    ys = jnp.stack([x_flat @ wf[m] + bf[m] for m in range(M)], axis=0)  # (M,B,K)
    if weights is not None:
        w = jax.nn.softmax(weights.astype(jnp.float32), axis=0)
        ys = w.reshape(M, 1, 1) * ys
    return jnp.mean(ys, axis=0)


if __name__ == "__main__":
    # Small shapes consistent with the module: NCHW input, M linear classifiers.
    B, C, H, W = 2, 4, 16, 16
    M, K = 3, 16
    D = C * H * W

    key = jax.random.PRNGKey(0)
    kx, kw, kb, kwt = jax.random.split(key, 4)

    x = jax.random.normal(kx, (B, C, H, W), dtype=jnp.float32)
    w_all = jax.random.normal(kw, (M, D, K), dtype=jnp.float32) * 0.02
    b_all = jax.random.normal(kb, (M, K), dtype=jnp.float32) * 0.1
    ens_weights = jax.random.normal(kwt, (M,), dtype=jnp.float32)

    # f32 path, weights=None
    y0 = jax.block_until_ready(
        ensemble_net_forward(x, w_all, b_all, None, compute_dtype=jnp.float32))
    r0 = ensemble_net_reference(x, w_all, b_all, None)
    assert jnp.allclose(y0, r0, atol=1e-4, rtol=1e-4), "mismatch (f32, weights=None)"

    # f32 path, softmax-weighted
    y1 = jax.block_until_ready(
        ensemble_net_forward(x, w_all, b_all, ens_weights,
                             compute_dtype=jnp.float32))
    r1 = ensemble_net_reference(x, w_all, b_all, ens_weights)
    assert jnp.allclose(y1, r1, atol=1e-4, rtol=1e-4), "mismatch (f32, weights)"

    # Default bf16 streaming path (halved HBM traffic, f32 accumulate).
    # NOTE: activations are also cast to bf16 (intended; keeps the MXU fast path).
    y2 = jax.block_until_ready(
        ensemble_net_forward(x, w_all, b_all, ens_weights))
    assert jnp.allclose(y2, r1, atol=3e-2, rtol=3e-2), "mismatch (bf16 path)"

    print("KERNEL_OK")
</pallas_src>

<mosaic_0001>
module attributes {stable_mosaic.version = 11 : i64} {
  func.func @_ensemble_kernel(%arg0: i32, %arg1: i32, %arg2: memref<8x1024xf32, #tpu.memory_space<vmem>>, %arg3: memref<1024x128xf32, #tpu.memory_space<vmem>>, %arg4: memref<1x128xf32, #tpu.memory_space<vmem>>, %arg5: memref<8x128xf32, #tpu.memory_space<vmem>>) attributes {dimension_semantics = [#tpu.dimension_semantics<parallel>, #tpu.dimension_semantics<arbitrary>], iteration_bounds = array<i64: 1, 1>, scalar_prefetch = 0 : i64, scratch_operands = 0 : i64, tpu.core_type = #tpu.core_type<tc>, window_params = [{transform_indices = @transform_0, window_bounds = array<i64: 8, 1024>}, {transform_indices = @transform_1, window_bounds = array<i64: 1024, 128>}, {pipeline_mode = #tpu.pipeline_mode<synchronous>, transform_indices = @transform_2, window_bounds = array<i64: 1, 128>}, {transform_indices = @transform_3, window_bounds = array<i64: 8, 128>}]} {
    %c0_i32 = arith.constant 0 : i32
    %0 = arith.cmpi eq, %arg1, %c0_i32 : i32
    %1 = arith.extui %0 : i1 to i32
    %c0_i32_0 = arith.constant 0 : i32
    %2 = arith.cmpi ne, %1, %c0_i32_0 : i32
    scf.if %2 {
      %c0_8 = arith.constant 0 : index
      %c0_9 = arith.constant 0 : index
      %9 = vector.load %arg4[%c0_8, %c0_9] : memref<1x128xf32, #tpu.memory_space<vmem>>, vector<1x128xf32>
      %10 = vector.shape_cast %9 : vector<1x128xf32> to vector<1x128xf32>
      %11 = vector.broadcast %10 : vector<1x128xf32> to vector<8x128xf32>
      %c0_10 = arith.constant 0 : index
      %c0_11 = arith.constant 0 : index
      %12 = vector.load %arg5[%c0_10, %c0_11] : memref<8x128xf32, #tpu.memory_space<vmem>>, vector<8x128xf32>
      tpu.vector_store %arg5[%c0_10, %c0_11], %11 {strides = array<i32>} : memref<8x128xf32, #tpu.memory_space<vmem>>, vector<8x128xf32>,
    } else {
    }
    %c0 = arith.constant 0 : index
    %c0_1 = arith.constant 0 : index
    %3 = vector.load %arg5[%c0, %c0_1] : memref<8x128xf32, #tpu.memory_space<vmem>>, vector<8x128xf32>
    %c0_2 = arith.constant 0 : index
    %c0_3 = arith.constant 0 : index
    %4 = vector.load %arg2[%c0_2, %c0_3] : memref<8x1024xf32, #tpu.memory_space<vmem>>, vector<8x1024xf32>
    %c0_4 = arith.constant 0 : index
    %c0_5 = arith.constant 0 : index
    %5 = vector.load %arg3[%c0_4, %c0_5] : memref<1024x128xf32, #tpu.memory_space<vmem>>, vector<1024x128xf32>
    %cst = arith.constant dense<0.000000e+00> : vector<8x128xf32>
    %6 = tpu.matmul %4, %5, %cst {dimension_numbers = #tpu.dot_dimension_numbers<[1], [0], [0], [1], [0, 0, 1, 1], [], []>} : vector<8x1024xf32>, vector<1024x128xf32>, vector<8x128xf32> -> vector<8x128xf32>
    %7 = arith.addf %3, %6 : vector<8x128xf32>
    %c0_6 = arith.constant 0 : index
    %c0_7 = arith.constant 0 : index
    %8 = vector.load %arg5[%c0_6, %c0_7] : memref<8x128xf32, #tpu.memory_space<vmem>>, vector<8x128xf32>
    tpu.vector_store %arg5[%c0_6, %c0_7], %7 {strides = array<i32>} : memref<8x128xf32, #tpu.memory_space<vmem>>, vector<8x128xf32>,
    return
  }
  func.func @transform_0(%arg0: i32, %arg1: i32) -> (i32, i32) {
    %c0_i32 = arith.constant 0 : i32
    return %arg0, %arg1 : i32, i32
  }
  func.func @transform_1(%arg0: i32, %arg1: i32) -> (i32, i32) {
    %c0_i32 = arith.constant 0 : i32
    %c0_i32_0 = arith.constant 0 : i32
    return %arg1, %c0_i32 : i32, i32
  }
  func.func @transform_2(%arg0: i32, %arg1: i32) -> (i32, i32) {
    %c0_i32 = arith.constant 0 : i32
    %c0_i32_0 = arith.constant 0 : i32
    %c0_i32_1 = arith.constant 0 : i32
    return %c0_i32, %c0_i32_0 : i32, i32
  }
  func.func @transform_3(%arg0: i32, %arg1: i32) -> (i32, i32) {
    %c0_i32 = arith.constant 0 : i32
    %c0_i32_0 = arith.constant 0 : i32
    return %arg0, %c0_i32 : i32, i32
  }
}

</mosaic_0001>

<bundles_post_ra>
// kernel: tpu_custom_call.1
= control target key start
LH: loop header
LB: loop body
LE: loop exit
PB: predicated region body
PF: predicated region fallthrough
CT: control target
= control target key end

     0   :  { %8 = vsyncpa [#allocation3], 0  ;;  %s905_s0 = inlined_call_operand.hbm [shape: f32[8,1024], index: 0, kind: input, shape index: {}]   ;;  %s906_s1 = inlined_call_operand.hbm [shape: f32[1024,128], index: 1, kind: input, shape index: {}]   ;;  %s907_s2 = inlined_call_operand.vmem [shape: f32[1,128], index: 2, kind: input, shape index: {}]   ;;  %s908_s3 = inlined_call_operand.hbm [shape: f32[8,128], index: 3, kind: output, shape index: {}]  }
   0x1   :  { %9 = vsyncpa [#allocation6], 0 }
   0x2   :  { %10 = vsyncpa [#allocation4], 0  ;;  %s834_s12 = smov [#allocation2]   ;;  %s835_s14 = smov [#allocation5]  }
   0x3   :  { %s17_s13 = sshll.u32 %s834_s12, 4  ;;  %s26_s15 = sshll.u32 %s835_s14, 4  ;;  %s18_s13 = int_to_ptr.vmem [resolvable:$true] %s17_s13  ;;  %s859_s15 = int_to_ptr.vmem [resolvable:$true] %s26_s15 }
   0x4   :  { %s762_s18 = scalar_lea.hbm %s905_s0, 1024 }
   0x5   :  { %p763_p0 = scmp.ne.s32.totalorder %s905_s0, %s762_s18  ;;  %p766_p1 = scmp.lt.u32.totalorder %s762_s18, %s905_s0 }
   0x7   :  { %p768_p2 = pnand %p766_p1, %p763_p0 }
   0x9   :  { %771 = shalt.err (!%p768_p2)
}
   0xa   :  { %s772_s23 = scalar_lea.vmem %s18_s13, 1024  ;;  %p777_p4 = scmp.lt.s32.totalorder %s18_s13, %s18_s13 }
   0xb   :  { %p773_p3 = scmp.ne.s32.totalorder %s18_s13, %s772_s23  ;;  %p778_p5 = scmp.lt.s32.totalorder %s772_s23, %s772_s23 }
   0xd   :  { %p779_p6 = por %p778_p5, %p777_p4 }
   0xf   :  { %p780_p7 = pnand %p779_p6, %p773_p3 }
  0x11   :  { %783 = shalt.err (!%p780_p7)
}
  0x12   :  { %20 = dma.hbm_to_vmem [thread:$0]  %s905_s0, 1024, %s18_s13, [#allocation3]  }
  0x13   :  { %s784_s28 = scalar_lea.hbm %s906_s1, 16384 }
  0x14   :  { %p785_p8 = scmp.ne.s32.totalorder %s906_s1, %s784_s28  ;;  %p788_p9 = scmp.lt.u32.totalorder %s784_s28, %s906_s1 }
  0x16   :  { %p790_p10 = pnand %p788_p9, %p785_p8 }
  0x18   :  { %793 = shalt.err (!%p790_p10)
}
  0x19   :  { %s794_s6 = scalar_lea.vmem %s859_s15, 16384  ;;  %p799_p12 = scmp.lt.s32.totalorder %s859_s15, %s859_s15 }
  0x1a   :  { %p795_p11 = scmp.ne.s32.totalorder %s859_s15, %s794_s6  ;;  %p800_p13 = scmp.lt.s32.totalorder %s794_s6, %s794_s6 }
  0x1c   :  { %p801_p0 = por %p800_p13, %p799_p12 }
  0x1e   :  { %p802_p1 = pnand %p801_p0, %p795_p11 }
  0x20   :  { %805 = shalt.err (!%p802_p1)
}
  0x21   :  { %s836_s0 = smov 128   ;;  %s837_s7 = smov 8  }
  0x22   :  { %32 = dma.hbm_to_vmem [thread:$0]  %s906_s1, 16384, %s859_s15, [#allocation6], %s836_s0, %s836_s0, %s837_s7  }
  0x23   :  { %828 = dma.done.wait [#allocation3], 1024  }
  0x24   :  { %829 = vsyncadd [#allocation3], 4294966272 }
  0x25   :  { %830 = dma.done.wait [#allocation6], 16384  }
  0x26   :  { %831 = vsyncadd [#allocation6], 4294950912  ;;  %v78_v0 = vld [vmem:[#allocation5 + $0x80] sm:$0xff]  ;;  %v79_v1 = vld [vmem:[#allocation5 + $0x88] sm:$0xff]  ;;  %s838_s11 = smov [#allocation7]  }
  0x27   :  { %v110_v2 = vld [vmem:[#allocation5 + $0x180] sm:$0xff]  ;;  %v629_v3 = vpack.c.bf16 %v79_v1, %v78_v0  ;;  %v111_v4 = vld [vmem:[#allocation5 + $0x188] sm:$0xff]  ;;  %v80_v11 = vld [vmem:[#allocation5 + $0x90] sm:$0xff]  ;;  %s478_s12 = sshll.u32 %s838_s11, 4  ;;  %s479_s12 = int_to_ptr.vmem [resolvable:$true] %s478_s12 }
  0x28   :  { %v62_v5 = vld [vmem:[#allocation5] sm:$0xff]  ;;  %v63_v6 = vld [vmem:[#allocation5 + $0x8] sm:$0xff]  ;;  %v661_v7 = vpack.c.bf16 %v111_v4, %v110_v2  ;;  %v81_v13 = vld [vmem:[#allocation5 + $0x98] sm:$0xff]  ;;  %s806_s13 = scalar_lea.vmem %s479_s12, 128  ;;  %p811_p3 = scmp.lt.s32.totalorder %s479_s12, %s479_s12 }
  0x29   :  { %v631_v8 = vpack.c.bf16 %v63_v6, %v62_v5  ;;  %v94_v9 = vld [vmem:[#allocation5 + $0x100] sm:$0xff]  ;;  %v95_v10 = vld [vmem:[#allocation5 + $0x108] sm:$0xff]  ;;  %630 = vmatprep.subr.bf16.mxu0 %v629_v3  ;;  %v112_v14 = vld [vmem:[#allocation5 + $0x190] sm:$0xff]  ;;  %v633_v16 = vpack.c.bf16 %v81_v13, %v80_v11  ;;  %p807_p2 = scmp.ne.s32.totalorder %s479_s12, %s806_s13  ;;  %p812_p4 = scmp.lt.s32.totalorder %s806_s13, %s806_s13 }
  0x2a   :  { %v663_v12 = vpack.c.bf16 %v95_v10, %v94_v9  ;;  %v113_v15 = vld [vmem:[#allocation5 + $0x198] sm:$0xff]  ;;  %662 = vmatprep.subr.bf16.mxu1 %v661_v7  ;;  %v64_v18 = vld [vmem:[#allocation5 + $0x10] sm:$0xff]  ;;  %v82_v23 = vld [vmem:[#allocation5 + $0xa0] sm:$0xff] }
  0x2b   :  { %632 = vmatpush3.bf16.msra.mxu0 %v631_v8  ;;  %v665_v17 = vpack.c.bf16 %v113_v15, %v112_v14  ;;  %v65_v19 = vld [vmem:[#allocation5 + $0x18] sm:$0xff]  ;;  %v96_v20 = vld [vmem:[#allocation5 + $0x110] sm:$0xff]  ;;  %v83_v24 = vld [vmem:[#allocation5 + $0xa8] sm:$0xff]  ;;  %p813_p5 = por %p812_p4, %p811_p3 }
  0x2c   :  { %664 = vmatpush3.bf16.msra.mxu1 %v663_v12  ;;  %v635_v21 = vpack.c.bf16 %v65_v19, %v64_v18  ;;  %v97_v22 = vld [vmem:[#allocation5 + $0x118] sm:$0xff]  ;;  %634 = vmatprep.subr.bf16.mxu0 %v633_v16  ;;  %v637_v26 = vpack.c.bf16 %v83_v24, %v82_v23  ;;  %v114_v27 = vld [vmem:[#allocation5 + $0x1a0] sm:$0xff]  ;;  %v115_v28 = vld [vmem:[#allocation5 + $0x1a8] sm:$0xff] }
  0x2d   :  { %666 = vmatprep.subr.bf16.mxu1 %v665_v17  ;;  %v667_v25 = vpack.c.bf16 %v97_v22, %v96_v20  ;;  %v66_v29 = vld [vmem:[#allocation5 + $0x20] sm:$0xff]  ;;  %v669_v30 = vpack.c.bf16 %v115_v28, %v114_v27  ;;  %v67_v31 = vld [vmem:[#allocation5 + $0x28] sm:$0xff]  ;;  %v84_v35 = vld [vmem:[#allocation5 + $0xb0] sm:$0xff]  ;;  %p814_p6 = pnand %p813_p5, %p807_p2 }
  0x2e   :  { %v98_v32 = vld [vmem:[#allocation5 + $0x120] sm:$0xff]  ;;  %v99_v33 = vld [vmem:[#allocation5 + $0x128] sm:$0xff]  ;;  %v639_v34 = vpack.c.bf16 %v67_v31, %v66_v29  ;;  %v85_v36 = vld [vmem:[#allocation5 + $0xb8] sm:$0xff] }
  0x2f   :  { %636 = vmatpush3.bf16.msra.mxu0 %v635_v21  ;;  %v116_v37 = vld [vmem:[#allocation5 + $0x1b0] sm:$0xff]  ;;  %v671_v38 = vpack.c.bf16 %v99_v33, %v98_v32  ;;  %v641_v39 = vpack.c.bf16 %v85_v36, %v84_v35  ;;  %v117_v40 = vld [vmem:[#allocation5 + $0x1b8] sm:$0xff]  ;;  %v86_v46 = vld [vmem:[#allocation5 + $0xc0] sm:$0xff] }
  0x30   :  { %668 = vmatpush3.bf16.msra.mxu1 %v667_v25  ;;  %638 = vmatprep.subr.bf16.mxu0 %v637_v26  ;;  %v68_v41 = vld [vmem:[#allocation5 + $0x30] sm:$0xff]  ;;  %v69_v42 = vld [vmem:[#allocation5 + $0x38] sm:$0xff]  ;;  %v673_v43 = vpack.c.bf16 %v117_v40, %v116_v37  ;;  %v87_v47 = vld [vmem:[#allocation5 + $0xc8] sm:$0xff] }
  0x31   :  { %670 = vmatprep.subr.bf16.mxu1 %v669_v30  ;;  %v100_v44 = vld [vmem:[#allocation5 + $0x130] sm:$0xff]  ;;  %v101_v45 = vld [vmem:[#allocation5 + $0x138] sm:$0xff]  ;;  %v118_v48 = vld [vmem:[#allocation5 + $0x1c0] sm:$0xff]  ;;  %v643_v50 = vpack.c.bf16 %v69_v42, %v68_v41  ;;  %v645_v52 = vpack.c.bf16 %v87_v47, %v86_v46 }
  0x32   :  { %v119_v49 = vld [vmem:[#allocation5 + $0x1c8] sm:$0xff]  ;;  %v675_v51 = vpack.c.bf16 %v101_v45, %v100_v44  ;;  %v70_v53 = vld [vmem:[#allocation5 + $0x40] sm:$0xff]  ;;  %v88_v58 = vld [vmem:[#allocation5 + $0xd0] sm:$0xff] }
  0x33   :  { %640 = vmatpush3.bf16.msra.mxu0 %v639_v34  ;;  %v71_v54 = vld [vmem:[#allocation5 + $0x48] sm:$0xff]  ;;  %v102_v55 = vld [vmem:[#allocation5 + $0x140] sm:$0xff]  ;;  %v677_v56 = vpack.c.bf16 %v119_v49, %v118_v48  ;;  %v89_v59 = vld [vmem:[#allocation5 + $0xd8] sm:$0xff] }
  0x34   :  { %672 = vmatpush3.bf16.msra.mxu1 %v671_v38  ;;  %642 = vmatprep.subr.bf16.mxu0 %v641_v39  ;;  %v103_v57 = vld [vmem:[#allocation5 + $0x148] sm:$0xff]  ;;  %v120_v60 = vld [vmem:[#allocation5 + $0x1d0] sm:$0xff]  ;;  %v121_v61 = vld [vmem:[#allocation5 + $0x1d8] sm:$0xff]  ;;  %v647_v62 = vpack.c.bf16 %v71_v54, %v70_v53  ;;  %v649_v0 = vpack.c.bf16 %v89_v59, %v88_v58 }
  0x35   :  { %674 = vmatprep.subr.bf16.mxu1 %v673_v43  ;;  %v679_v63 = vpack.c.bf16 %v103_v57, %v102_v55  ;;  %v72_v1 = vld [vmem:[#allocation5 + $0x50] sm:$0xff]  ;;  %v73_v2 = vld [vmem:[#allocation5 + $0x58] sm:$0xff]  ;;  %v681_v4 = vpack.c.bf16 %v121_v61, %v120_v60  ;;  %v90_v6 = vld [vmem:[#allocation5 + $0xe0] sm:$0xff] }
  0x36   :  { %v104_v3 = vld [vmem:[#allocation5 + $0x150] sm:$0xff]  ;;  %v105_v5 = vld [vmem:[#allocation5 + $0x158] sm:$0xff]  ;;  %v91_v7 = vld [vmem:[#allocation5 + $0xe8] sm:$0xff]  ;;  %v651_v10 = vpack.c.bf16 %v73_v2, %v72_v1 }
  0x37   :  { %644 = vmatpush3.bf16.msra.mxu0 %v643_v50  ;;  %v122_v8 = vld [vmem:[#allocation5 + $0x1e0] sm:$0xff]  ;;  %v123_v9 = vld [vmem:[#allocation5 + $0x1e8] sm:$0xff]  ;;  %v683_v13 = vpack.c.bf16 %v105_v5, %v104_v3  ;;  %v653_v14 = vpack.c.bf16 %v91_v7, %v90_v6  ;;  %v57_v17 = vld [vmem:[#allocation2 + $0x18] sm:$0xff] }
  0x38   :  { %676 = vmatpush3.bf16.msra.mxu1 %v675_v51  ;;  %646 = vmatprep.subr.bf16.mxu0 %v645_v52  ;;  %v74_v11 = vld [vmem:[#allocation5 + $0x60] sm:$0xff]  ;;  %v75_v12 = vld [vmem:[#allocation5 + $0x68] sm:$0xff]  ;;  %v685_v18 = vpack.c.bf16 %v123_v9, %v122_v8  ;;  %v92_v20 = vld [vmem:[#allocation5 + $0xf0] sm:$0xff] }
  0x39   :  { %678 = vmatprep.subr.bf16.mxu1 %v677_v56  ;;  %v106_v15 = vld [vmem:[#allocation5 + $0x160] sm:$0xff]  ;;  %v55_v16 = vld [vmem:[#allocation2 + $0x8] sm:$0xff]  ;;  %v93_v21 = vld [vmem:[#allocation5 + $0xf8] sm:$0xff]  ;;  %324 = vmatprep.mubr.f32.mxu1 %v57_v17  ;;  %v655_v24 = vpack.c.bf16 %v75_v12, %v74_v11 }
  0x3a   :  { %v107_v19 = vld [vmem:[#allocation5 + $0x168] sm:$0xff]  ;;  %254 = vmatprep.mubr.f32.mxu0 %v55_v16  ;;  %v124_v22 = vld [vmem:[#allocation5 + $0x1f0] sm:$0xff]  ;;  %v125_v23 = vld [vmem:[#allocation5 + $0x1f8] sm:$0xff]  ;;  %v657_v26 = vpack.c.bf16 %v93_v21, %v92_v20 }
  0x3b   :  { %648 = vmatpush3.bf16.msra.mxu0 %v647_v62  ;;  %v687_v25 = vpack.c.bf16 %v107_v19, %v106_v15  ;;  %v76_v27 = vld [vmem:[#allocation5 + $0x70] sm:$0xff]  ;;  %v77_v28 = vld [vmem:[#allocation5 + $0x78] sm:$0xff]  ;;  %v689_v30 = vpack.c.bf16 %v125_v23, %v124_v22  ;;  %v142_v32 = vld [vmem:[#allocation5 + $0x280] sm:$0xff] }
  0x3c   :  { %680 = vmatpush3.bf16.msra.mxu1 %v679_v63  ;;  %650 = vmatprep.subr.bf16.mxu0 %v649_v0  ;;  %v108_v29 = vld [vmem:[#allocation5 + $0x170] sm:$0xff]  ;;  %v109_v31 = vld [vmem:[#allocation5 + $0x178] sm:$0xff]  ;;  %v143_v33 = vld [vmem:[#allocation5 + $0x288] sm:$0xff]  ;;  %v659_v36 = vpack.c.bf16 %v77_v28, %v76_v27 }
  0x3d   :  { %682 = vmatprep.subr.bf16.mxu1 %v681_v4  ;;  %v174_v34 = vld [vmem:[#allocation5 + $0x380] sm:$0xff]  ;;  %v175_v35 = vld [vmem:[#allocation5 + $0x388] sm:$0xff]  ;;  %v691_v37 = vpack.c.bf16 %v109_v31, %v108_v29  ;;  %v693_v38 = vpack.c.bf16 %v143_v33, %v142_v32  ;;  %v144_v44 = vld [vmem:[#allocation5 + $0x290] sm:$0xff] }
  0x3e   :  { %v126_v39 = vld [vmem:[#allocation5 + $0x200] sm:$0xff]  ;;  %v127_v40 = vld [vmem:[#allocation5 + $0x208] sm:$0xff]  ;;  %v725_v42 = vpack.c.bf16 %v175_v35, %v174_v34  ;;  %v145_v45 = vld [vmem:[#allocation5 + $0x298] sm:$0xff] }
  0x3f   :  { %652 = vmatpush3.bf16.msra.mxu0 %v651_v10  ;;  %v158_v41 = vld [vmem:[#allocation5 + $0x300] sm:$0xff]  ;;  %v159_v43 = vld [vmem:[#allocation5 + $0x308] sm:$0xff]  ;;  %v176_v46 = vld [vmem:[#allocation5 + $0x390] sm:$0xff]  ;;  %v695_v50 = vpack.c.bf16 %v127_v40, %v126_v39  ;;  %v697_v52 = vpack.c.bf16 %v145_v45, %v144_v44 }
  0x40   :  { %684 = vmatpush3.bf16.msra.mxu1 %v683_v13  ;;  %654 = vmatprep.subr.bf16.mxu0 %v653_v14  ;;  %v177_v47 = vld [vmem:[#allocation5 + $0x398] sm:$0xff]  ;;  %v54_v48 = vld [vmem:[#allocation2] sm:$0xff]  ;;  %v56_v49 = vld [vmem:[#allocation2 + $0x10] sm:$0xff]  ;;  %v727_v51 = vpack.c.bf16 %v159_v43, %v158_v41 }
  0x41   :  { %686 = vmatprep.subr.bf16.mxu1 %v685_v18  ;;  %v128_v53 = vld [vmem:[#allocation5 + $0x210] sm:$0xff]  ;;  %v129_v54 = vld [vmem:[#allocation5 + $0x218] sm:$0xff]  ;;  %v729_v56 = vpack.c.bf16 %v177_v47, %v176_v46  ;;  %v146_v58 = vld [vmem:[#allocation5 + $0x2a0] sm:$0xff] }
  0x42   :  { %v160_v55 = vld [vmem:[#allocation5 + $0x310] sm:$0xff]  ;;  %v161_v57 = vld [vmem:[#allocation5 + $0x318] sm:$0xff]  ;;  %v147_v59 = vld [vmem:[#allocation5 + $0x2a8] sm:$0xff]  ;;  %v699_v62 = vpack.c.bf16 %v129_v54, %v128_v53 }
  0x43   :  { %656 = vmatpush3.bf16.msra.mxu0 %v655_v24  ;;  %v178_v60 = vld [vmem:[#allocation5 + $0x3a0] sm:$0xff]  ;;  %v179_v61 = vld [vmem:[#allocation5 + $0x3a8] sm:$0xff]  ;;  %v731_v63 = vpack.c.bf16 %v161_v57, %v160_v55  ;;  %v701_v0 = vpack.c.bf16 %v147_v59, %v146_v58  ;;  %v148_v6 = vld [vmem:[#allocation5 + $0x2b0] sm:$0xff] }
  0x44   :  { %688 = vmatpush3.bf16.msra.mxu1 %v687_v25  ;;  %658 = vmatprep.subr.bf16.mxu0 %v657_v26  ;;  %v130_v1 = vld [vmem:[#allocation5 + $0x220] sm:$0xff]  ;;  %v131_v2 = vld [vmem:[#allocation5 + $0x228] sm:$0xff]  ;;  %v733_v4 = vpack.c.bf16 %v179_v61, %v178_v60  ;;  %v149_v7 = vld [vmem:[#allocation5 + $0x2b8] sm:$0xff] }
  0x45   :  { %690 = vmatprep.subr.bf16.mxu1 %v689_v30  ;;  %v162_v3 = vld [vmem:[#allocation5 + $0x320] sm:$0xff]  ;;  %v163_v5 = vld [vmem:[#allocation5 + $0x328] sm:$0xff]  ;;  %v180_v8 = vld [vmem:[#allocation5 + $0x3b0] sm:$0xff]  ;;  %v703_v10 = vpack.c.bf16 %v131_v2, %v130_v1  ;;  %v705_v12 = vpack.c.bf16 %v149_v7, %v148_v6 }
  0x46   :  { %v181_v9 = vld [vmem:[#allocation5 + $0x3b8] sm:$0xff]  ;;  %v735_v11 = vpack.c.bf16 %v163_v5, %v162_v3  ;;  %v132_v13 = vld [vmem:[#allocation5 + $0x230] sm:$0xff]  ;;  %v150_v18 = vld [vmem:[#allocation5 + $0x2c0] sm:$0xff] }
  0x47   :  { %660 = vmatpush3.bf16.msra.mxu0 %v659_v36  ;;  %v133_v14 = vld [vmem:[#allocation5 + $0x238] sm:$0xff]  ;;  %v164_v15 = vld [vmem:[#allocation5 + $0x330] sm:$0xff]  ;;  %v737_v16 = vpack.c.bf16 %v181_v9, %v180_v8  ;;  %v151_v19 = vld [vmem:[#allocation5 + $0x2c8] sm:$0xff] }
  0x48   :  { %692 = vmatpush3.bf16.msra.mxu1 %v691_v37  ;;  %694 = vmatprep.subr.bf16.mxu0 %v693_v38  ;;  %v165_v17 = vld [vmem:[#allocation5 + $0x338] sm:$0xff]  ;;  %v182_v20 = vld [vmem:[#allocation5 + $0x3c0] sm:$0xff]  ;;  %v183_v21 = vld [vmem:[#allocation5 + $0x3c8] sm:$0xff]  ;;  %v707_v22 = vpack.c.bf16 %v133_v14, %v132_v13  ;;  %v709_v26 = vpack.c.bf16 %v151_v19, %v150_v18 }
  0x49   :  { %726 = vmatprep.subr.bf16.mxu1 %v725_v42  ;;  %v59_v23 = vld [vmem:[#allocation2 + $0x28] sm:$0xff]  ;;  %v61_v24 = vld [vmem:[#allocation2 + $0x38] sm:$0xff]  ;;  %v739_v25 = vpack.c.bf16 %v165_v17, %v164_v15  ;;  %v134_v27 = vld [vmem:[#allocation5 + $0x240] sm:$0xff]  ;;  %v741_v30 = vpack.c.bf16 %v183_v21, %v182_v20 }
  0x4a   :  { %255 = vmatmul.mubr.f32.vlgmr.msra.gmra.mrb[0].mxu0 %v54_v48  ;;  %v135_v28 = vld [vmem:[#allocation5 + $0x248] sm:$0xff]  ;;  %v166_v29 = vld [vmem:[#allocation5 + $0x340] sm:$0xff]  ;;  %v152_v32 = vld [vmem:[#allocation5 + $0x2d0] sm:$0xff] }
  0x4b   :  { %325 = vmatmul.mubr.f32.vlgmr.msra.gmra.mrb[0].mxu1 %v56_v49  ;;  %696 = vmatpush3.bf16.msra.mxu0 %v695_v50  ;;  %v167_v31 = vld [vmem:[#allocation5 + $0x348] sm:$0xff]  ;;  %v153_v33 = vld [vmem:[#allocation5 + $0x2d8] sm:$0xff]  ;;  %v184_v34 = vld [vmem:[#allocation5 + $0x3d0] sm:$0xff]  ;;  %v711_v36 = vpack.c.bf16 %v135_v28, %v134_v27 }
  0x4c   :  { %728 = vmatpush3.bf16.msra.mxu1 %v727_v51  ;;  %698 = vmatprep.subr.bf16.mxu0 %v697_v52  ;;  %v185_v35 = vld [vmem:[#allocation5 + $0x3d8] sm:$0xff]  ;;  %v743_v37 = vpack.c.bf16 %v167_v31, %v166_v29  ;;  %v713_v38 = vpack.c.bf16 %v153_v33, %v152_v32  ;;  %v136_v39 = vld [vmem:[#allocation5 + $0x250] sm:$0xff]  ;;  %v154_v44 = vld [vmem:[#allocation5 + $0x2e0] sm:$0xff] }
  0x4d   :  { %730 = vmatprep.subr.bf16.mxu1 %v729_v56  ;;  %394 = vmatprep.mubr.f32.mxu0 %v59_v23  ;;  %v137_v40 = vld [vmem:[#allocation5 + $0x258] sm:$0xff]  ;;  %v168_v41 = vld [vmem:[#allocation5 + $0x350] sm:$0xff]  ;;  %v745_v42 = vpack.c.bf16 %v185_v35, %v184_v34  ;;  %v155_v45 = vld [vmem:[#allocation5 + $0x2e8] sm:$0xff] }
  0x4e   :  { %464 = vmatprep.mubr.f32.mxu1 %v61_v24  ;;  %v169_v43 = vld [vmem:[#allocation5 + $0x358] sm:$0xff]  ;;  %v186_v46 = vld [vmem:[#allocation5 + $0x3e0] sm:$0xff]  ;;  %v187_v47 = vld [vmem:[#allocation5 + $0x3e8] sm:$0xff]  ;;  %v715_v48 = vpack.c.bf16 %v137_v40, %v136_v39  ;;  %v717_v50 = vpack.c.bf16 %v155_v45, %v154_v44 }
  0x4f   :  { %700 = vmatpush3.bf16.msra.mxu0 %v699_v62  ;;  %v747_v49 = vpack.c.bf16 %v169_v43, %v168_v41  ;;  %v138_v51 = vld [vmem:[#allocation5 + $0x260] sm:$0xff]  ;;  %v139_v52 = vld [vmem:[#allocation5 + $0x268] sm:$0xff]  ;;  %v749_v54 = vpack.c.bf16 %v187_v47, %v186_v46  ;;  %v156_v56 = vld [vmem:[#allocation5 + $0x2f0] sm:$0xff] }
  0x50   :  { %732 = vmatpush3.bf16.msra.mxu1 %v731_v63  ;;  %702 = vmatprep.subr.bf16.mxu0 %v701_v0  ;;  %v170_v53 = vld [vmem:[#allocation5 + $0x360] sm:$0xff]  ;;  %v171_v55 = vld [vmem:[#allocation5 + $0x368] sm:$0xff]  ;;  %v157_v57 = vld [vmem:[#allocation5 + $0x2f8] sm:$0xff]  ;;  %v719_v60 = vpack.c.bf16 %v139_v52, %v138_v51 }
  0x51   :  { %734 = vmatprep.subr.bf16.mxu1 %v733_v4  ;;  %v188_v58 = vld [vmem:[#allocation5 + $0x3f0] sm:$0xff]  ;;  %v189_v59 = vld [vmem:[#allocation5 + $0x3f8] sm:$0xff]  ;;  %v751_v61 = vpack.c.bf16 %v171_v55, %v170_v53  ;;  %v721_v62 = vpack.c.bf16 %v157_v57, %v156_v56  ;;  %v58_v6 = vld [vmem:[#allocation2 + $0x20] sm:$0xff] }
  0x52   :  { %v140_v63 = vld [vmem:[#allocation5 + $0x270] sm:$0xff]  ;;  %v141_v0 = vld [vmem:[#allocation5 + $0x278] sm:$0xff]  ;;  %v753_v1 = vpack.c.bf16 %v189_v59, %v188_v58 }
  0x53   :  { %704 = vmatpush3.bf16.msra.mxu0 %v703_v10  ;;  %v172_v2 = vld [vmem:[#allocation5 + $0x370] sm:$0xff]  ;;  %v173_v3 = vld [vmem:[#allocation5 + $0x378] sm:$0xff]  ;;  %v723_v4 = vpack.c.bf16 %v141_v0, %v140_v63 }
  0x54   :  { %736 = vmatpush3.bf16.msra.mxu1 %v735_v11  ;;  %706 = vmatprep.subr.bf16.mxu0 %v705_v12  ;;  %v755_v5 = vpack.c.bf16 %v173_v3, %v172_v2  ;;  %v60_v7 = vld [vmem:[#allocation2 + $0x30] sm:$0xff] }
  0x55   :  { %738 = vmatprep.subr.bf16.mxu1 %v737_v16 }
  0x57   :  { %708 = vmatpush3.bf16.msra.mxu0 %v707_v22  ;;  %v488_v22 = vld [vmem:[%s907_s2] ss:$0 sm:$0xff] }
  0x58   :  { %740 = vmatpush3.bf16.msra.mxu1 %v739_v25  ;;  %710 = vmatprep.subr.bf16.mxu0 %v709_v26 }
  0x59   :  { %742 = vmatprep.subr.bf16.mxu1 %v741_v30 }
  0x5b   :  { %712 = vmatpush3.bf16.msra.mxu0 %v711_v36 }
  0x5c   :  { %744 = vmatpush3.bf16.msra.mxu1 %v743_v37  ;;  %714 = vmatprep.subr.bf16.mxu0 %v713_v38 }
  0x5d   :  { %746 = vmatprep.subr.bf16.mxu1 %v745_v42 }
  0x5f   :  { %716 = vmatpush3.bf16.msra.mxu0 %v715_v48 }
  0x60   :  { %748 = vmatpush3.bf16.msra.mxu1 %v747_v49  ;;  %718 = vmatprep.subr.bf16.mxu0 %v717_v50 }
  0x61   :  { %750 = vmatprep.subr.bf16.mxu1 %v749_v54 }
  0x63   :  { %720 = vmatpush3.bf16.msra.mxu0 %v719_v60 }
  0x64   :  { %752 = vmatpush3.bf16.msra.mxu1 %v751_v61  ;;  %722 = vmatprep.subr.bf16.mxu0 %v721_v62 }
  0x65   :  { %754 = vmatprep.subr.bf16.mxu1 %v753_v1 }
  0x67   :  { %724 = vmatpush3.bf16.msra.mxu0 %v723_v4 }
  0x68   :  { %756 = vmatpush3.bf16.msra.mxu1 %v755_v5 }
  0x6a   :  { %395 = vmatmul.mubr.f32.vlgmr.msra.gmra.mrb[2].mxu0 %v58_v6 }
  0x6b   :  { %465 = vmatmul.mubr.f32.vlgmr.msra.gmra.mrb[2].mxu1 %v60_v7 }
 0x11d   :  { %v521_v8 = vpop.f32.mrb[0].mxu0 }
 0x11e   :  { %v556_v9 = vpop.f32.mrb[0].mxu1  ;;  %v522_v10 = vpop.f32.mrb[1].mxu0 }
 0x11f   :  { %v523_v11 = vadd.f32 %v522_v10, %v521_v8  ;;  %v557_v12 = vpop.f32.mrb[1].mxu1 }
 0x120   :  { %v558_v13 = vadd.f32 %v557_v12, %v556_v9 }
 0x122   :  { %v327_v14 = vadd.f32 %v558_v13, %v523_v11 }
 0x13d   :  { %v591_v15 = vpop.f32.mrb[2].mxu0 }
 0x13e   :  { %v592_v16 = vpop.f32.mrb[3].mxu0  ;;  %v626_v17 = vpop.f32.mrb[2].mxu1 }
 0x13f   :  { %v593_v18 = vadd.f32 %v592_v16, %v591_v15  ;;  %v627_v19 = vpop.f32.mrb[3].mxu1 }
 0x140   :  { %v628_v20 = vadd.f32 %v627_v19, %v626_v17 }
 0x141   :  { %v397_v21 = vadd.f32 %v593_v18, %v327_v14 }
 0x143   :  { %v467_v23 = vadd.f32 %v628_v20, %v397_v21 }
 0x145   :  { %v470_v24 = vadd.f32 %v488_v22, %v467_v23 }
 0x147   :  { %471 = vst [vmem:[#allocation7] sm:$0xff] %v470_v24 }
 0x148   :  { %817 = shalt.err (!%p814_p6)
}
 0x149   :  { %s818_s16 = scalar_lea.hbm %s908_s3, 128 }
 0x14a   :  { %p819_p7 = scmp.ne.s32.totalorder %s908_s3, %s818_s16  ;;  %p822_p8 = scmp.lt.u32.totalorder %s818_s16, %s908_s3 }
 0x14c   :  { %p824_p9 = pnand %p822_p8, %p819_p7 }
 0x14e   :  { %827 = shalt.err (!%p824_p9)
}
 0x14f   :  { %481 = dma.vmem_to_hbm [thread:$0]  %s479_s12, 128, %s908_s3, [#allocation4]  }
 0x150   :  { %832 = dma.done.wait [#allocation4], 128  }
 0x151   :  { %833 = vsyncadd [#allocation4], 4294967168 }
 0x152   :  { %485 = vsyncpa [#allocation3], 1 }
 0x153   :  { %486 = vsyncpa [#allocation6], 1 }
 0x154   :  { %487 = vsyncpa [#allocation4], 1 }

</bundles_post_ra>
